<compile_context>
chip_gen: v7x
topology: tpu7x:2x2x1
jax: 0.10.0
libtpu: 0.0.40
codegen_flags: <defaults>
</compile_context>

<pallas_src>
import functools

import numpy as np
import jax
import jax.numpy as jnp
from jax import lax
from jax.experimental import pallas as pl
from jax.experimental.pallas import tpu as pltpu

TEMPERATURE = 0.0007        # faithful to the reference module (yes, not 0.07)
BASE_TEMPERATURE = 0.07
_NEG_BIG = -1e30            # finite stand-in for -inf (avoids inf*0 NaNs)


# ------------------------------ tiling helpers ------------------------------ #

def _round_up(x, m):
    return ((x + m - 1) // m) * m


def _pick_tile(size, pref, align):
    """(padded_size, tile) with tile | padded_size and TPU-legal shapes."""
    size = max(int(size), 1)
    if size <= pref:
        p = _round_up(size, align)
        return p, p
    return _round_up(size, pref), pref


_MULTI_TC_KINDS = ("v4", "v5p", "v7", "7x")


def _min_anchor_tiles():
    """>=2 anchor tiles only on chips with >1 TensorCore per device (v7x /
    megacore); on 1-TC chips extra anchor tiles just re-stream feats."""
    try:
        kind = jax.devices()[0].device_kind.lower()
    except Exception:
        return 1
    return 2 if any(t in kind for t in _MULTI_TC_KINDS) else 1


def _pick_anchor_tile(n, pref, min_tiles=1):
    """(padded_rows, tile_rows): tile multiple of 8, >= min_tiles tiles when
    the batch is big enough, tile <= pref."""
    n = max(int(n), 1)
    ntiles = max(min_tiles, -(-n // pref))
    if n < 8 * ntiles:                       # too small to split into 8-row tiles
        ntiles = max(1, n // 8)
    tm = max(8, _round_up(-(-n // ntiles), 8))
    n_pad = _round_up(n, tm)
    return n_pad, tm


def _pad2(x, rows, cols, value=0):
    r, c = x.shape
    return jnp.pad(x, ((0, rows - r), (0, cols - c)), constant_values=value)


# ------------------------------- Pallas kernels ----------------------------- #

def _supcon_mask_kernel(a_ref, f_ref, mpos_ref, selfcol_ref, cnt_ref, out_ref,
                        m_sc, z_sc, s1_sc, ahi_sc, alo_sc, *, n_valid, tk):
    """Supervised-contrastive branch: one (anchor-tile, contrast-tile) step."""
    kblk = pl.program_id(1)
    last = pl.num_programs(1) - 1
    inv_t = 1.0 / TEMPERATURE

    @pl.when(kblk == 0)
    def _init():
        m_sc[...] = jnp.full_like(m_sc, _NEG_BIG)
        z_sc[...] = jnp.zeros_like(z_sc)
        s1_sc[...] = jnp.zeros_like(s1_sc)
        # cache the scaled anchors ONCE as a hi/lo bf16 pair (effectively f32
        # accuracy on the anchor side of the MXU, no per-step scale+cast).
        a_scaled = a_ref[...] * inv_t                      # [tm, C] f32
        a_hi = a_scaled.astype(jnp.bfloat16)
        ahi_sc[...] = a_hi
        alo_sc[...] = (a_scaled - a_hi.astype(jnp.float32)).astype(jnp.bfloat16)

    # contrast features arrive bf16 straight from HBM (half the DMA bytes).
    f = f_ref[...]                                          # [tk, C] bf16
    dn = (((1,), (1,)), ((), ()))                           # contract feature axis
    raw = lax.dot_general(ahi_sc[...], f, dimension_numbers=dn,
                          preferred_element_type=jnp.float32)
    raw = raw + lax.dot_general(alo_sc[...], f, dimension_numbers=dn,
                                preferred_element_type=jnp.float32)  # [tm, tk]

    col = kblk * tk + lax.broadcasted_iota(jnp.int32, raw.shape, 1)
    self_mask = col != selfcol_ref[...]                     # drop self-contrast

    def _softmax_update(raw_for_max, denom_mask):
        # torch: max over ALL real columns; denominator excludes the self column.
        m_new = jnp.maximum(m_sc[...], jnp.max(raw_for_max, axis=1, keepdims=True))
        alpha = jnp.exp(m_sc[...] - m_new)
        p = jnp.exp(jnp.where(denom_mask, raw, _NEG_BIG) - m_new)
        z_sc[...] = alpha * z_sc[...] + jnp.sum(p, axis=1, keepdims=True)
        m_sc[...] = m_new

    @pl.when(kblk != last)
    def _interior():                    # no padded columns -> skip in-range masks
        _softmax_update(raw, self_mask)

    @pl.when(kblk == last)
    def _boundary():                    # only the last tile can hold padded cols
        in_range = col < n_valid
        _softmax_update(jnp.where(in_range, raw, _NEG_BIG),
                        jnp.logical_and(self_mask, in_range))

    # positives: mask is bf16 with self column + padded columns already zero,
    # so 0 * finite garbage contributes nothing; counts come precomputed.
    mpos = mpos_ref[...].astype(jnp.float32)
    s1_sc[...] = s1_sc[...] + jnp.sum(mpos * raw, axis=1, keepdims=True)

    @pl.when(kblk == last)
    def _finalize():
        # exact division (off the hot path); zero-positive rows give nan/inf
        # exactly like the torch reference (padded rows are sliced off outside).
        mean_pos = s1_sc[...] / cnt_ref[...] - m_sc[...]
        log_denom = jnp.log(z_sc[...] + 1e-12)
        loss = (-(TEMPERATURE / BASE_TEMPERATURE)) * (mean_pos - log_denom)
        out_ref[...] = jnp.broadcast_to(loss, out_ref.shape)   # lane-dense store


def _infonce_kernel(q_ref, k_ref, queue_ref, out_ref,
                    m_sc, z_sc, lp_sc, qhi_sc, qlo_sc, *, k_valid, tk):
    """MoCo/InfoNCE branch: cross_entropy([l_pos, l_neg], label=0), one queue tile."""
    j = pl.program_id(1)
    last = pl.num_programs(1) - 1
    inv_t = 1.0 / TEMPERATURE

    @pl.when(j == 0)
    def _init():
        q = q_ref[...]                                      # [tm, C] f32
        l_pos = jnp.sum(q * k_ref[...], axis=1, keepdims=True) * inv_t
        lp_sc[...] = l_pos
        m_sc[...] = l_pos                  # running max starts at the positive logit
        z_sc[...] = jnp.ones_like(z_sc)    # exp(l_pos - l_pos)
        q_scaled = q * inv_t
        q_hi = q_scaled.astype(jnp.bfloat16)
        qhi_sc[...] = q_hi
        qlo_sc[...] = (q_scaled - q_hi.astype(jnp.float32)).astype(jnp.bfloat16)

    dn = (((1,), (1,)), ((), ()))
    qu = queue_ref[...]                                     # [tk, C] bf16 from HBM
    neg = lax.dot_general(qhi_sc[...], qu, dimension_numbers=dn,
                          preferred_element_type=jnp.float32)
    neg = neg + lax.dot_general(qlo_sc[...], qu, dimension_numbers=dn,
                                preferred_element_type=jnp.float32)  # [tm, tk]

    def _update(neg_masked):
        m_new = jnp.maximum(m_sc[...], jnp.max(neg_masked, axis=1, keepdims=True))
        alpha = jnp.exp(m_sc[...] - m_new)
        z_sc[...] = alpha * z_sc[...] + jnp.sum(jnp.exp(neg_masked - m_new),
                                                axis=1, keepdims=True)
        m_sc[...] = m_new

    @pl.when(j != last)
    def _interior():
        _update(neg)

    @pl.when(j == last)
    def _boundary():
        col = j * tk + lax.broadcasted_iota(jnp.int32, neg.shape, 1)
        _update(jnp.where(col < k_valid, neg, _NEG_BIG))

    @pl.when(j == last)
    def _finalize():
        loss = m_sc[...] + jnp.log(z_sc[...]) - lp_sc[...]  # logsumexp - l_pos
        out_ref[...] = jnp.broadcast_to(loss, out_ref.shape)


# ------------------------------ pallas_call glue ----------------------------- #

def _run_supcon_mask(anchors, feats, mask_pos, self_cols, pos_counts,
                     block_anchor=256, block_contrast=1024):
    n, C = anchors.shape
    N = feats.shape[0]
    c_pad = _round_up(max(C, 128), 128)
    n_pad, tm = _pick_anchor_tile(n, block_anchor, _min_anchor_tiles())
    nc_pad, tk = _pick_tile(N, block_contrast, 128)

    a_p = _pad2(anchors.astype(jnp.float32), n_pad, c_pad)
    f_p = _pad2(feats.astype(jnp.bfloat16), nc_pad, c_pad)       # bf16 in HBM
    m_p = _pad2(mask_pos.astype(jnp.bfloat16), n_pad, nc_pad)    # bf16 in HBM
    s_p = _pad2(self_cols.reshape(n, 1).astype(jnp.int32), n_pad, 1, value=-1)
    c_p = _pad2(pos_counts.reshape(n, 1).astype(jnp.float32), n_pad, 1)

    kernel = functools.partial(_supcon_mask_kernel, n_valid=N, tk=tk)
    # (On v5e one could additionally request pipeline_mode=pl.Buffered(3) on the
    #  feats/mask specs; per-tile footprint here already hides the DMA well.)
    out = pl.pallas_call(
        kernel,
        out_shape=jax.ShapeDtypeStruct((n_pad, 128), jnp.float32),
        grid=(n_pad // tm, nc_pad // tk),
        in_specs=[
            pl.BlockSpec((tm, c_pad), lambda i, k: (i, 0)),   # anchors (resident in k)
            pl.BlockSpec((tk, c_pad), lambda i, k: (k, 0)),   # contrast-feature tile
            pl.BlockSpec((tm, tk), lambda i, k: (i, k)),      # positives-mask tile
            pl.BlockSpec((tm, 1), lambda i, k: (i, 0)),       # self-column indices
            pl.BlockSpec((tm, 1), lambda i, k: (i, 0)),       # positive counts
        ],
        out_specs=pl.BlockSpec((tm, 128), lambda i, k: (i, 0)),
        scratch_shapes=[pltpu.VMEM((tm, 1), jnp.float32),     # running max
                        pltpu.VMEM((tm, 1), jnp.float32),     # running denom
                        pltpu.VMEM((tm, 1), jnp.float32),     # sum(mask*logits)
                        pltpu.VMEM((tm, c_pad), jnp.bfloat16),  # anchor hi
                        pltpu.VMEM((tm, c_pad), jnp.bfloat16)], # anchor lo
        compiler_params=pltpu.CompilerParams(
            dimension_semantics=("parallel", "arbitrary")),
    )(a_p, f_p, m_p, s_p, c_p)
    return jnp.mean(out[:n, 0])


def _run_infonce(q, k, queue, block_anchor=256, block_contrast=1024):
    n, C = q.shape
    K = queue.shape[0]
    c_pad = _round_up(max(C, 128), 128)
    n_pad, tm = _pick_anchor_tile(n, block_anchor, _min_anchor_tiles())
    kq_pad, tk = _pick_tile(max(K, 1), block_contrast, 128)

    q_p = _pad2(q.astype(jnp.float32), n_pad, c_pad)
    k_p = _pad2(k.astype(jnp.float32), n_pad, c_pad)
    qu_p = _pad2(queue.astype(jnp.bfloat16), kq_pad, c_pad)       # bf16 in HBM

    kernel = functools.partial(_infonce_kernel, k_valid=K, tk=tk)
    out = pl.pallas_call(
        kernel,
        out_shape=jax.ShapeDtypeStruct((n_pad, 128), jnp.float32),
        grid=(n_pad // tm, kq_pad // tk),
        in_specs=[
            pl.BlockSpec((tm, c_pad), lambda i, j: (i, 0)),   # q (resident in j)
            pl.BlockSpec((tm, c_pad), lambda i, j: (i, 0)),   # k (resident in j)
            pl.BlockSpec((tk, c_pad), lambda i, j: (j, 0)),   # queue tile
        ],
        out_specs=pl.BlockSpec((tm, 128), lambda i, j: (i, 0)),
        scratch_shapes=[pltpu.VMEM((tm, 1), jnp.float32),     # running max
                        pltpu.VMEM((tm, 1), jnp.float32),     # running denom
                        pltpu.VMEM((tm, 1), jnp.float32),     # l_pos
                        pltpu.VMEM((tm, c_pad), jnp.bfloat16),  # q hi
                        pltpu.VMEM((tm, c_pad), jnp.bfloat16)], # q lo
        compiler_params=pltpu.CompilerParams(
            dimension_semantics=("parallel", "arbitrary")),
    )(q_p, k_p, qu_p)
    return jnp.mean(out[:n, 0])


def supcon_loss(features, index=None, mask=None, batch_size=-1,
                block_anchor=256, block_contrast=1024):
    """Mirror of SupConLoss.forward (both branches)."""
    features = jnp.asarray(features, jnp.float32)
    if index is None:
        index = np.ones(batch_size, dtype=bool)
    # TODO(synk): dynamic boolean row-selection has no static-shape Pallas
    # equivalent; resolved host-side (same semantics as torch advanced indexing).
    sel = np.nonzero(np.asarray(index, dtype=bool))[0]
    if mask is not None:
        mask = jnp.asarray(mask, jnp.float32)                    # [B, N]
        anchors = features[:batch_size][sel]                     # [n, C]
        n = anchors.shape[0]
        self_cols = jnp.asarray(sel, jnp.int32)                  # self-contrast cols
        # fuse logits_mask (zero at (r, sel[r])) into the positives mask here, so
        # only ONE [n, N] (bf16) mask is DMA'd; denominator mask rebuilt in-kernel.
        mask_pos = mask[sel].at[jnp.arange(n), self_cols].set(0.0)
        pos_counts = mask_pos.sum(axis=1)                        # exact, host-side
        return _run_supcon_mask(anchors, features, mask_pos, self_cols, pos_counts,
                                block_anchor, block_contrast)
    else:
        q = features[:batch_size][sel]
        k = features[batch_size:batch_size * 2][sel]
        queue = features[batch_size * 2:]
        return _run_infonce(q, k, queue, block_anchor, block_contrast)


# ------------------------------- pure-JAX reference -------------------------- #

def _ref_supcon_mask(features, mask, batch_size, sel):
    anchors = features[:batch_size][sel]
    logits = jnp.matmul(anchors, features.T,
                        precision=lax.Precision.HIGHEST) / TEMPERATURE
    logits = logits - jnp.max(logits, axis=1, keepdims=True)
    diag = jnp.arange(batch_size)
    lmask = jnp.ones_like(mask).at[diag, diag].set(0.0)[sel]
    m = mask[sel] * lmask
    exp_logits = jnp.exp(logits) * lmask
    log_prob = logits - jnp.log(exp_logits.sum(1, keepdims=True) + 1e-12)
    mlpp = (m * log_prob).sum(1) / m.sum(1)
    return jnp.mean(-(TEMPERATURE / BASE_TEMPERATURE) * mlpp)


def _ref_infonce(features, batch_size, sel):
    q = features[:batch_size][sel]
    k = features[batch_size:2 * batch_size][sel]
    queue = features[2 * batch_size:]
    l_pos = jnp.sum(q * k, axis=1, keepdims=True)
    l_neg = jnp.matmul(q, queue.T, precision=lax.Precision.HIGHEST)
    logits = jnp.concatenate([l_pos, l_neg], axis=1) / TEMPERATURE
    lse = jax.scipy.special.logsumexp(logits, axis=1)
    return jnp.mean(lse - logits[:, 0])


# -------------------------------------- main --------------------------------- #

if __name__ == "__main__":
    key = jax.random.PRNGKey(0)
    k1, k2 = jax.random.split(key)
    B, C = 16, 128

    # ---- branch 1: mask given (supervised contrastive) ----
    N1 = 320                                                   # 3 contrast tiles @ 128
    feats1 = jax.random.normal(k1, (N1, C), jnp.float32)
    feats1 = feats1 / jnp.linalg.norm(feats1, axis=1, keepdims=True)
    labels = np.arange(N1) % 8                                 # 8 classes
    mask_np = (labels[:B, None] == labels[None, :]).astype(np.float32)   # [B, N1]
    sel_all = np.arange(B)

    loss_mask = supcon_loss(feats1, index=None, mask=jnp.asarray(mask_np),
                            batch_size=B, block_contrast=128)
    loss_mask = jax.block_until_ready(loss_mask)
    ref_mask = jax.block_until_ready(
        _ref_supcon_mask(feats1, jnp.asarray(mask_np), B, sel_all))

    # ---- branch 2: mask None (q / k / queue, cross-entropy with label 0) ----
    K_queue = 200                                              # padded to 256, 2 tiles
    N2 = 2 * B + K_queue
    feats2 = jax.random.normal(k2, (N2, C), jnp.float32)
    feats2 = feats2 / jnp.linalg.norm(feats2, axis=1, keepdims=True)

    loss_nce = supcon_loss(feats2, index=None, mask=None, batch_size=B,
                           block_contrast=128)
    loss_nce = jax.block_until_ready(loss_nce)
    ref_nce = jax.block_until_ready(_ref_infonce(feats2, B, sel_all))

    def _close(got, ref, rtol, atol):
        g, r = float(got), float(ref)
        return bool(np.isfinite(g)) and abs(g - r) <= atol + rtol * abs(r)

    # contrast-side features are bf16 in HBM (1/T ~= 1428 amplifies their rounding
    # into O(1) absolute logit differences); the anchor side is hi/lo-split so the
    # remaining error is smaller than v2, but keep a small absolute slack on NCE.
    ok = _close(loss_mask, ref_mask, rtol=0.05, atol=0.05)
    ok = ok and _close(loss_nce, ref_nce, rtol=0.05, atol=1.0)

    assert ok, (float(loss_mask), float(ref_mask), float(loss_nce), float(ref_nce))
    print("KERNEL_OK")
</pallas_src>

<mosaic_0001>
module attributes {stable_mosaic.version = 11 : i64} {
  func.func @_supcon_mask_kernel(%arg0: i32, %arg1: i32, %arg2: memref<16x128xf32, #tpu.memory_space<vmem>>, %arg3: memref<128x128xbf16, #tpu.memory_space<vmem>>, %arg4: memref<16x128xbf16, #tpu.memory_space<vmem>>, %arg5: memref<16x1xi32, #tpu.memory_space<vmem>>, %arg6: memref<16x1xf32, #tpu.memory_space<vmem>>, %arg7: memref<16x128xf32, #tpu.memory_space<vmem>>, %arg8: memref<16x1xf32, #tpu.memory_space<vmem>>, %arg9: memref<16x1xf32, #tpu.memory_space<vmem>>, %arg10: memref<16x1xf32, #tpu.memory_space<vmem>>, %arg11: memref<16x128xbf16, #tpu.memory_space<vmem>>, %arg12: memref<16x128xbf16, #tpu.memory_space<vmem>>) attributes {dimension_semantics = [#tpu.dimension_semantics<parallel>, #tpu.dimension_semantics<arbitrary>], iteration_bounds = array<i64: 1, 3>, scalar_prefetch = 0 : i64, scratch_operands = 5 : i64, tpu.core_type = #tpu.core_type<tc>, window_params = [{transform_indices = @transform_0, window_bounds = array<i64: 16, 128>}, {transform_indices = @transform_1, window_bounds = array<i64: 128, 128>}, {transform_indices = @transform_2, window_bounds = array<i64: 16, 128>}, {transform_indices = @transform_3, window_bounds = array<i64: 16, 1>}, {transform_indices = @transform_4, window_bounds = array<i64: 16, 1>}, {transform_indices = @transform_5, window_bounds = array<i64: 16, 128>}]} {
    %c0_i32 = arith.constant 0 : i32
    %0 = arith.cmpi eq, %arg1, %c0_i32 : i32
    %1 = arith.extui %0 : i1 to i32
    %c0_i32_0 = arith.constant 0 : i32
    %2 = arith.cmpi ne, %1, %c0_i32_0 : i32
    scf.if %2 {
      %cst_21 = arith.constant -1.000000e+30 : f32
      %33 = vector.broadcast %cst_21 : f32 to vector<16x1xf32>
      %c0_22 = arith.constant 0 : index
      %c0_23 = arith.constant 0 : index
      %34 = vector.load %arg8[%c0_22, %c0_23] : memref<16x1xf32, #tpu.memory_space<vmem>>, vector<16x1xf32>
      tpu.vector_store %arg8[%c0_22, %c0_23], %33 {strides = array<i32>} : memref<16x1xf32, #tpu.memory_space<vmem>>, vector<16x1xf32>,
      %cst_24 = arith.constant 0.000000e+00 : f32
      %35 = vector.broadcast %cst_24 : f32 to vector<16x1xf32>
      %c0_25 = arith.constant 0 : index
      %c0_26 = arith.constant 0 : index
      %36 = vector.load %arg9[%c0_25, %c0_26] : memref<16x1xf32, #tpu.memory_space<vmem>>, vector<16x1xf32>
      tpu.vector_store %arg9[%c0_25, %c0_26], %35 {strides = array<i32>} : memref<16x1xf32, #tpu.memory_space<vmem>>, vector<16x1xf32>,
      %cst_27 = arith.constant 0.000000e+00 : f32
      %37 = vector.broadcast %cst_27 : f32 to vector<16x1xf32>
      %c0_28 = arith.constant 0 : index
      %c0_29 = arith.constant 0 : index
      %38 = vector.load %arg10[%c0_28, %c0_29] : memref<16x1xf32, #tpu.memory_space<vmem>>, vector<16x1xf32>
      tpu.vector_store %arg10[%c0_28, %c0_29], %37 {strides = array<i32>} : memref<16x1xf32, #tpu.memory_space<vmem>>, vector<16x1xf32>,
      %c0_30 = arith.constant 0 : index
      %c0_31 = arith.constant 0 : index
      %39 = vector.load %arg2[%c0_30, %c0_31] : memref<16x128xf32, #tpu.memory_space<vmem>>, vector<16x128xf32>
      %cst_32 = arith.constant 1428.57141 : f32
      %40 = vector.broadcast %cst_32 : f32 to vector<16x128xf32>
      %41 = arith.mulf %39, %40 : vector<16x128xf32>
      %42 = arith.truncf %41 : vector<16x128xf32> to vector<16x128xbf16>
      %c0_33 = arith.constant 0 : index
      %c0_34 = arith.constant 0 : index
      %43 = vector.load %arg11[%c0_33, %c0_34] : memref<16x128xbf16, #tpu.memory_space<vmem>>, vector<16x128xbf16>
      tpu.vector_store %arg11[%c0_33, %c0_34], %42 {strides = array<i32>} : memref<16x128xbf16, #tpu.memory_space<vmem>>, vector<16x128xbf16>,
      %44 = arith.extf %42 : vector<16x128xbf16> to vector<16x128xf32>
      %45 = arith.subf %41, %44 : vector<16x128xf32>
      %46 = arith.truncf %45 : vector<16x128xf32> to vector<16x128xbf16>
      %c0_35 = arith.constant 0 : index
      %c0_36 = arith.constant 0 : index
      %47 = vector.load %arg12[%c0_35, %c0_36] : memref<16x128xbf16, #tpu.memory_space<vmem>>, vector<16x128xbf16>
      tpu.vector_store %arg12[%c0_35, %c0_36], %46 {strides = array<i32>} : memref<16x128xbf16, #tpu.memory_space<vmem>>, vector<16x128xbf16>,
    } else {
    }
    %c0 = arith.constant 0 : index
    %c0_1 = arith.constant 0 : index
    %3 = vector.load %arg3[%c0, %c0_1] : memref<128x128xbf16, #tpu.memory_space<vmem>>, vector<128x128xbf16>
    %c0_2 = arith.constant 0 : index
    %c0_3 = arith.constant 0 : index
    %4 = vector.load %arg11[%c0_2, %c0_3] : memref<16x128xbf16, #tpu.memory_space<vmem>>, vector<16x128xbf16>
    %cst = arith.constant dense<0.000000e+00> : vector<16x128xf32>
    %5 = tpu.matmul %4, %3, %cst {dimension_numbers = #tpu.dot_dimension_numbers<[1], [1], [0], [0], [0, 0, 1, 0], [], []>} : vector<16x128xbf16>, vector<128x128xbf16>, vector<16x128xf32> -> vector<16x128xf32>
    %c0_4 = arith.constant 0 : index
    %c0_5 = arith.constant 0 : index
    %6 = vector.load %arg12[%c0_4, %c0_5] : memref<16x128xbf16, #tpu.memory_space<vmem>>, vector<16x128xbf16>
    %cst_6 = arith.constant dense<0.000000e+00> : vector<16x128xf32>
    %7 = tpu.matmul %6, %3, %cst_6 {dimension_numbers = #tpu.dot_dimension_numbers<[1], [1], [0], [0], [0, 0, 1, 0], [], []>} : vector<16x128xbf16>, vector<128x128xbf16>, vector<16x128xf32> -> vector<16x128xf32>
    %8 = arith.addf %5, %7 : vector<16x128xf32>
    %c128_i32 = arith.constant 128 : i32
    %9 = arith.muli %arg1, %c128_i32 : i32
    %10 = tpu.iota {dimensions = array<i32: 1>} : vector<16x128xi32>
    %11 = vector.broadcast %9 : i32 to vector<16x128xi32>
    %12 = arith.addi %11, %10 : vector<16x128xi32>
    %c0_7 = arith.constant 0 : index
    %c0_8 = arith.constant 0 : index
    %13 = vector.load %arg5[%c0_7, %c0_8] : memref<16x1xi32, #tpu.memory_space<vmem>>, vector<16x1xi32>
    %14 = vector.broadcast %13 : vector<16x1xi32> to vector<16x128xi32>
    %15 = arith.cmpi ne, %12, %14 : vector<16x128xi32>
    %c2_i32 = arith.constant 2 : i32
    %16 = arith.cmpi ne, %arg1, %c2_i32 : i32
    %17 = arith.extui %16 : i1 to i32
    %c0_i32_9 = arith.constant 0 : i32
    %18 = arith.cmpi ne, %17, %c0_i32_9 : i32
    scf.if %18 {
      %c0_21 = arith.constant 0 : index
      %c0_22 = arith.constant 0 : index
      %33 = vector.load %arg8[%c0_21, %c0_22] : memref<16x1xf32, #tpu.memory_space<vmem>>, vector<16x1xf32>
      %cst_23 = arith.constant dense<0xFF800000> : vector<16xf32>
      %34 = vector.multi_reduction <maximumf>, %8, %cst_23 [1] : vector<16x128xf32> to vector<16xf32>
      %35 = vector.shape_cast %34 : vector<16xf32> to vector<16x1xf32>
      %36 = arith.maximumf %33, %35 : vector<16x1xf32>
      %c0_24 = arith.constant 0 : index
      %c0_25 = arith.constant 0 : index
      %37 = vector.load %arg8[%c0_24, %c0_25] : memref<16x1xf32, #tpu.memory_space<vmem>>, vector<16x1xf32>
      %38 = arith.subf %37, %36 : vector<16x1xf32>
      %39 = math.exp %38 : vector<16x1xf32>
      %cst_26 = arith.constant -1.000000e+30 : f32
      %40 = vector.broadcast %cst_26 : f32 to vector<16x128xf32>
      %41 = arith.select %15, %8, %40 : vector<16x128xi1>, vector<16x128xf32>
      %42 = vector.broadcast %36 : vector<16x1xf32> to vector<16x128xf32>
      %43 = arith.subf %41, %42 : vector<16x128xf32>
      %44 = math.exp %43 : vector<16x128xf32>
      %c0_27 = arith.constant 0 : index
      %c0_28 = arith.constant 0 : index
      %45 = vector.load %arg9[%c0_27, %c0_28] : memref<16x1xf32, #tpu.memory_space<vmem>>, vector<16x1xf32>
      %46 = arith.mulf %39, %45 : vector<16x1xf32>
      %cst_29 = arith.constant dense<0.000000e+00> : vector<16xf32>
      %47 = vector.multi_reduction <add>, %44, %cst_29 [1] : vector<16x128xf32> to vector<16xf32>
      %48 = vector.shape_cast %47 : vector<16xf32> to vector<16x1xf32>
      %49 = arith.addf %46, %48 : vector<16x1xf32>
      %c0_30 = arith.constant 0 : index
      %c0_31 = arith.constant 0 : index
      %50 = vector.load %arg9[%c0_30, %c0_31] : memref<16x1xf32, #tpu.memory_space<vmem>>, vector<16x1xf32>
      tpu.vector_store %arg9[%c0_30, %c0_31], %49 {strides = array<i32>} : memref<16x1xf32, #tpu.memory_space<vmem>>, vector<16x1xf32>,
      %c0_32 = arith.constant 0 : index
      %c0_33 = arith.constant 0 : index
      %51 = vector.load %arg8[%c0_32, %c0_33] : memref<16x1xf32, #tpu.memory_space<vmem>>, vector<16x1xf32>
      tpu.vector_store %arg8[%c0_32, %c0_33], %36 {strides = array<i32>} : memref<16x1xf32, #tpu.memory_space<vmem>>, vector<16x1xf32>,
    } else {
    }
    %c2_i32_10 = arith.constant 2 : i32
    %19 = arith.cmpi eq, %arg1, %c2_i32_10 : i32
    %20 = arith.extui %19 : i1 to i32
    %c0_i32_11 = arith.constant 0 : i32
    %21 = arith.cmpi ne, %20, %c0_i32_11 : i32
    scf.if %21 {
      %c320_i32 = arith.constant 320 : i32
      %33 = vector.broadcast %c320_i32 : i32 to vector<16x128xi32>
      %34 = arith.cmpi slt, %12, %33 : vector<16x128xi32>
      %cst_21 = arith.constant -1.000000e+30 : f32
      %35 = vector.broadcast %cst_21 : f32 to vector<16x128xf32>
      %36 = arith.select %34, %8, %35 : vector<16x128xi1>, vector<16x128xf32>
      %37 = arith.andi %15, %34 : vector<16x128xi1>
      %c0_22 = arith.constant 0 : index
      %c0_23 = arith.constant 0 : index
      %38 = vector.load %arg8[%c0_22, %c0_23] : memref<16x1xf32, #tpu.memory_space<vmem>>, vector<16x1xf32>
      %cst_24 = arith.constant dense<0xFF800000> : vector<16xf32>
      %39 = vector.multi_reduction <maximumf>, %36, %cst_24 [1] : vector<16x128xf32> to vector<16xf32>
      %40 = vector.shape_cast %39 : vector<16xf32> to vector<16x1xf32>
      %41 = arith.maximumf %38, %40 : vector<16x1xf32>
      %c0_25 = arith.constant 0 : index
      %c0_26 = arith.constant 0 : index
      %42 = vector.load %arg8[%c0_25, %c0_26] : memref<16x1xf32, #tpu.memory_space<vmem>>, vector<16x1xf32>
      %43 = arith.subf %42, %41 : vector<16x1xf32>
      %44 = math.exp %43 : vector<16x1xf32>
      %cst_27 = arith.constant -1.000000e+30 : f32
      %45 = vector.broadcast %cst_27 : f32 to vector<16x128xf32>
      %46 = arith.select %37, %8, %45 : vector<16x128xi1>, vector<16x128xf32>
      %47 = vector.broadcast %41 : vector<16x1xf32> to vector<16x128xf32>
      %48 = arith.subf %46, %47 : vector<16x128xf32>
      %49 = math.exp %48 : vector<16x128xf32>
      %c0_28 = arith.constant 0 : index
      %c0_29 = arith.constant 0 : index
      %50 = vector.load %arg9[%c0_28, %c0_29] : memref<16x1xf32, #tpu.memory_space<vmem>>, vector<16x1xf32>
      %51 = arith.mulf %44, %50 : vector<16x1xf32>
      %cst_30 = arith.constant dense<0.000000e+00> : vector<16xf32>
      %52 = vector.multi_reduction <add>, %49, %cst_30 [1] : vector<16x128xf32> to vector<16xf32>
      %53 = vector.shape_cast %52 : vector<16xf32> to vector<16x1xf32>
      %54 = arith.addf %51, %53 : vector<16x1xf32>
      %c0_31 = arith.constant 0 : index
      %c0_32 = arith.constant 0 : index
      %55 = vector.load %arg9[%c0_31, %c0_32] : memref<16x1xf32, #tpu.memory_space<vmem>>, vector<16x1xf32>
      tpu.vector_store %arg9[%c0_31, %c0_32], %54 {strides = array<i32>} : memref<16x1xf32, #tpu.memory_space<vmem>>, vector<16x1xf32>,
      %c0_33 = arith.constant 0 : index
      %c0_34 = arith.constant 0 : index
      %56 = vector.load %arg8[%c0_33, %c0_34] : memref<16x1xf32, #tpu.memory_space<vmem>>, vector<16x1xf32>
      tpu.vector_store %arg8[%c0_33, %c0_34], %41 {strides = array<i32>} : memref<16x1xf32, #tpu.memory_space<vmem>>, vector<16x1xf32>,
    } else {
    }
    %c0_12 = arith.constant 0 : index
    %c0_13 = arith.constant 0 : index
    %22 = vector.load %arg4[%c0_12, %c0_13] : memref<16x128xbf16, #tpu.memory_space<vmem>>, vector<16x128xbf16>
    %23 = arith.extf %22 : vector<16x128xbf16> to vector<16x128xf32>
    %c0_14 = arith.constant 0 : index
    %c0_15 = arith.constant 0 : index
    %24 = vector.load %arg10[%c0_14, %c0_15] : memref<16x1xf32, #tpu.memory_space<vmem>>, vector<16x1xf32>
    %25 = arith.mulf %23, %8 : vector<16x128xf32>
    %cst_16 = arith.constant dense<0.000000e+00> : vector<16xf32>
    %26 = vector.multi_reduction <add>, %25, %cst_16 [1] : vector<16x128xf32> to vector<16xf32>
    %27 = vector.shape_cast %26 : vector<16xf32> to vector<16x1xf32>
    %28 = arith.addf %24, %27 : vector<16x1xf32>
    %c0_17 = arith.constant 0 : index
    %c0_18 = arith.constant 0 : index
    %29 = vector.load %arg10[%c0_17, %c0_18] : memref<16x1xf32, #tpu.memory_space<vmem>>, vector<16x1xf32>
    tpu.vector_store %arg10[%c0_17, %c0_18], %28 {strides = array<i32>} : memref<16x1xf32, #tpu.memory_space<vmem>>, vector<16x1xf32>,
    %c2_i32_19 = arith.constant 2 : i32
    %30 = arith.cmpi eq, %arg1, %c2_i32_19 : i32
    %31 = arith.extui %30 : i1 to i32
    %c0_i32_20 = arith.constant 0 : i32
    %32 = arith.cmpi ne, %31, %c0_i32_20 : i32
    scf.if %32 {
      %c0_21 = arith.constant 0 : index
      %c0_22 = arith.constant 0 : index
      %33 = vector.load %arg10[%c0_21, %c0_22] : memref<16x1xf32, #tpu.memory_space<vmem>>, vector<16x1xf32>
      %c0_23 = arith.constant 0 : index
      %c0_24 = arith.constant 0 : index
      %34 = vector.load %arg6[%c0_23, %c0_24] : memref<16x1xf32, #tpu.memory_space<vmem>>, vector<16x1xf32>
      %35 = arith.divf %33, %34 : vector<16x1xf32>
      %c0_25 = arith.constant 0 : index
      %c0_26 = arith.constant 0 : index
      %36 = vector.load %arg8[%c0_25, %c0_26] : memref<16x1xf32, #tpu.memory_space<vmem>>, vector<16x1xf32>
      %37 = arith.subf %35, %36 : vector<16x1xf32>
      %c0_27 = arith.constant 0 : index
      %c0_28 = arith.constant 0 : index
      %38 = vector.load %arg9[%c0_27, %c0_28] : memref<16x1xf32, #tpu.memory_space<vmem>>, vector<16x1xf32>
      %cst_29 = arith.constant 9.99999996E-13 : f32
      %39 = vector.broadcast %cst_29 : f32 to vector<16x1xf32>
      %40 = arith.addf %38, %39 : vector<16x1xf32>
      %41 = math.log %40 : vector<16x1xf32>
      %42 = arith.subf %37, %41 : vector<16x1xf32>
      %cst_30 = arith.constant -0.00999999977 : f32
      %43 = vector.broadcast %cst_30 : f32 to vector<16x1xf32>
      %44 = arith.mulf %43, %42 : vector<16x1xf32>
      %45 = vector.shape_cast %44 : vector<16x1xf32> to vector<16x1xf32>
      %46 = vector.broadcast %45 : vector<16x1xf32> to vector<16x128xf32>
      %c0_31 = arith.constant 0 : index
      %c0_32 = arith.constant 0 : index
      %47 = vector.load %arg7[%c0_31, %c0_32] : memref<16x128xf32, #tpu.memory_space<vmem>>, vector<16x128xf32>
      tpu.vector_store %arg7[%c0_31, %c0_32], %46 {strides = array<i32>} : memref<16x128xf32, #tpu.memory_space<vmem>>, vector<16x128xf32>,
    } else {
    }
    return
  }
  func.func @transform_0(%arg0: i32, %arg1: i32) -> (i32, i32) {
    %c0_i32 = arith.constant 0 : i32
    %c0_i32_0 = arith.constant 0 : i32
    return %arg0, %c0_i32 : i32, i32
  }
  func.func @transform_1(%arg0: i32, %arg1: i32) -> (i32, i32) {
    %c0_i32 = arith.constant 0 : i32
    %c0_i32_0 = arith.constant 0 : i32
    return %arg1, %c0_i32 : i32, i32
  }
  func.func @transform_2(%arg0: i32, %arg1: i32) -> (i32, i32) {
    %c0_i32 = arith.constant 0 : i32
    return %arg0, %arg1 : i32, i32
  }
  func.func @transform_3(%arg0: i32, %arg1: i32) -> (i32, i32) {
    %c0_i32 = arith.constant 0 : i32
    %c0_i32_0 = arith.constant 0 : i32
    return %arg0, %c0_i32 : i32, i32
  }
  func.func @transform_4(%arg0: i32, %arg1: i32) -> (i32, i32) {
    %c0_i32 = arith.constant 0 : i32
    %c0_i32_0 = arith.constant 0 : i32
    return %arg0, %c0_i32 : i32, i32
  }
  func.func @transform_5(%arg0: i32, %arg1: i32) -> (i32, i32) {
    %c0_i32 = arith.constant 0 : i32
    %c0_i32_0 = arith.constant 0 : i32
    return %arg0, %c0_i32 : i32, i32
  }
}

</mosaic_0001>

<bundles_post_ra>
// kernel: tpu_custom_call.1
= control target key start
LH: loop header
LB: loop body
LE: loop exit
PB: predicated region body
PF: predicated region fallthrough
CT: control target
= control target key end

     0   :  { %10 = vsyncpa [#allocation8], 0  ;;  %s1473_s0 = inlined_call_operand.vmem [shape: f32[16,128], index: 0, kind: input, shape index: {}]   ;;  %s1474_s1 = inlined_call_operand.hbm [shape: bf16[384,128], index: 1, kind: input, shape index: {}]   ;;  %s1475_s2 = inlined_call_operand.vmem [shape: bf16[16,384], index: 2, kind: input, shape index: {}]   ;;  %s1476_s3 = inlined_call_operand.vmem [shape: s32[16,1], index: 3, kind: input, shape index: {}]   ;;  %s1477_s4 = inlined_call_operand.vmem [shape: f32[16,1], index: 4, kind: input, shape index: {}]   ;;  %s1478_s5 = inlined_call_operand.hbm [shape: f32[16,128], index: 5, kind: output, shape index: {}]  }
   0x1   :  { %12 = vsyncpa [#allocation8 + $0x1], 0 }
   0x2   :  { %13 = vsyncpa [#allocation9], 0  ;;  %s1232_s18 = smov 0   ;;  %s1234_s19 = smov 0  }
   0x3   :  { %s1236_s20 = smov 0   ;;  %s1238_s21 = smov 0  }
   0x4   :  { %s1240_s22 = smov 0   ;;  %s1242_s23 = smov 0  }
   0x5 LB: > { %s875_s24 = sadd.s32 4294967295, %s1186_s23   ;;  %s28_s25 = sadd.s32 1, %s1182_s22  ;;  %s1186_s23 = sphi %s1242_s23, %s19_s23   ;;  %s1182_s22 = sphi %s1240_s22, %s1486_s22   ;;  %s1178_s21 = sphi %s1238_s21, %s1485_s21   ;;  %s1174_s20 = sphi %s1236_s20, %s1484_s20   ;;  %s1170_s19 = sphi %s1234_s19, %s1483_s19   ;;  %s1166_s18 = sphi %s1232_s18, %s1482_s18  }
   0x6   : > { %p29_p0 = scmp.ge.s32.totalorder %s28_s25, 3  ;;  %s64_s26 = sadd.s32 1, %s1174_s20 }
   0x7   : > { %p71_p1 = scmp.ne.s32.totalorder %s1174_s20, %s1170_s19  ;;  %p72_p2 = scmp.eq.s32.totalorder %s1186_s23, 0 }
   0x8   : > { %s1488_s25 = smov (%p29_p0, %s28_s25), 0  ;;  %p77_p4 = scmp.ne.s32.totalorder %s1170_s19, %s1166_s18 }
   0x9   : > { %p1268_p3 = por %p72_p2, %p71_p1  ;;  %s61_s28 = ssub.s32 %s1182_s22, %s1488_s25 }
   0xa   : > { %p78_p5 = scmp.eq.s32.totalorder %s875_s24, 0  ;;  %p62_p6 = scmp.eq.s32.totalorder %s61_s28, 0 }
   0xb   : > { %p880_p8 = scmp.ge.s32.totalorder %s1186_s23, 3 }
   0xc   : > { %p1277_p7 = por %p78_p5, %p77_p4  ;;  %s1286_s6 = sand.u32 (!%p880_p8), 1, %s1174_s20  }
   0xd   : > { %s1282_s30 = scalar_select %p62_p6, %s1174_s20, %s64_s26  }
   0xe   : > { %230 = sbr.rel (%p880_p8) target bundleno = 47 (0x2f), region = 28  ;;  %s906_s7 = sshll.u32 (!%p880_p8), %s1182_s22, 10 }
   0xf   : > { %s881_s8 = sshll.u32 (!%p880_p8), %s1286_s6, 6  ;;  %s1293_s11 = scalar_lea.hbm (!%p880_p8), %s1474_s1, %s906_s7 }
  0x10   : > { %s238_s12 = scalar_lea.vmem (!%p880_p8), [#allocation7], %s881_s8  ;;  %s235_s14 = scalar_lea.sflag (!%p880_p8), [#allocation8], %s1286_s6 }
  0x11   : > { %s245_s13 = sshll.u32 (!%p880_p8), %s238_s12, 4  ;;  %s1078_s15 = scalar_lea.hbm (!%p880_p8), %s1293_s11, 1024  ;;  %s1295_s13 = int_to_ptr.vmem [resolvable:$true] %s245_s13 }
  0x12   : > { %p1079_p9 = scmp.ne.s32.totalorder (!%p880_p8), %s1293_s11, %s1078_s15  ;;  %s1082_s18 = scalar_lea.hbm (!%p880_p8), %s1474_s1, 3072 }
  0x13   : > { %p1083_p12 = scmp.lt.u32.totalorder (!%p880_p8), %s1293_s11, %s1474_s1  ;;  %p1084_p13 = scmp.lt.u32.totalorder (!%p880_p8), %s1082_s18, %s1078_s15 }
  0x14   : > { %p1080_p10 = pnand (!%p880_p8), %p1079_p9, %p1268_p3  ;;  %p1086_p1 = scmp.lt.u32.totalorder (!%p880_p8), %s1078_s15, %s1293_s11 }
  0x15   : > { %p1085_p0 = por %p1084_p13, %p1083_p12 }
  0x16   : > { %p1081_p11 = pneg %p1080_p10 }
  0x17   : > { %p1087_p2 = por %p1086_p1, %p1085_p0 }
  0x19   : > { %p1088_p4 = pnand %p1087_p2, %p1081_p11 }
  0x1b   : > { %1091 = shalt.err (!%p1088_p4)
}
  0x1c   : > { %s1092_s7 = scalar_lea.vmem %s1295_s13, 1024  ;;  %s1188_s8 = smov [#allocation7]  }
  0x1d   : > { %p1093_p5 = scmp.ne.s32.totalorder %s1295_s13, %s1092_s7  ;;  %s1096_s9 = sshll.u32 %s1188_s8, 4  ;;  %s1097_s9 = int_to_ptr.vmem [resolvable:$false] %s1096_s9 }
  0x1e   : > { %s1098_s10 = scalar_lea.vmem %s1097_s9, 2048  ;;  %p1099_p9 = scmp.lt.s32.totalorder %s1295_s13, %s1097_s9 }
  0x1f   : > { %p1094_p6 = pnand %p1093_p5, %p1268_p3  ;;  %p1100_p10 = scmp.lt.s32.totalorder %s1098_s10, %s1092_s7 }
  0x21   : > { %p1095_p8 = pneg %p1094_p6  ;;  %p1101_p12 = por %p1100_p10, %p1099_p9 }
  0x23   : > { %p1102_p13 = pnand %p1101_p12, %p1095_p8 }
  0x25   : > { %1105 = shalt.err (!%p1102_p13)
}
  0x26   : > { %s1189_s12 = smov 64   ;;  %s1190_s15 = smov 4  }
  0x27   : > { %971 = dma.hbm_to_vmem [thread:$0]  (%p1268_p3), %s1293_s11, 1024, %s1295_s13, %s235_s14, %s1189_s12, %s1189_s12, %s1190_s15  }
  0x28   : > { %254 = sbr.rel (!%p1268_p3) target bundleno = 47 (0x2f), region = 36  ;;  %s884_s16 = sshll.u32 (%p1268_p3), %s1286_s6, 3 }
  0x29   : > { %s885_s17 = sshll.u32 (%p1268_p3), %s1182_s22, 2  ;;  %s258_s7 = scalar_lea.vmem (%p1268_p3), [#allocation10], %s884_s16 }
  0x2a   : > { %s263_s28 = scalar_lea.vmem (%p1268_p3), %s1475_s2, %s885_s17 }
  0x2b   : > { %v279_v0 = vld [vmem:[%s263_s28] sm:$0xf] (%p1268_p3)  ;;  %v281_v1 = vld [vmem:[%s263_s28 + $0xc] sm:$0xf] (%p1268_p3) }
  0x2c   : > { %280 = vst [vmem:[%s258_s7] sm:$0xf] (%p1268_p3), %v279_v0  ;;  %282 = vst [vmem:[%s258_s7 + $0x4] sm:$0xf] (%p1268_p3), %v281_v1 }
  0x2f PF: > { %p886_p11 = scmp.ge.s32.totalorder %s1186_s23, 1  ;;  %p308_p0 = scmp.lt.s32.totalorder %s1186_s23, 4 }
  0x31   : > { %p309_p3 = pnand %p886_p11, %p308_p0 }
  0x32   : > { %s314_s27 = sand.u32 (!%p309_p3), 1, %s1170_s19  }
  0x33   : > { %312 = sbr.rel (%p309_p3) target bundleno = 1551 (0x60f), region = 77  ;;  %s887_s6 = sshll.u32 (!%p309_p3), %s314_s27, 6 }
  0x34   : > { %s315_s11 = scalar_lea.sflag (!%p309_p3), [#allocation8], %s314_s27  ;;  %s1331_s13 = scalar_lea.vmem (!%p309_p3), [#allocation7], %s887_s6 }
  0x3a   : > { %1157 = dma.done.wait (%p1277_p7), %s315_s11, 1024  }
  0x3b   : > { %1159 = vsyncadd (%p1277_p7), %s315_s11, 4294966272  ;;  %s888_s14 = sshll.u32 %s314_s27, 3  ;;  %p889_p1 = scmp.ne.s32.totalorder %s1178_s21, 0 }
  0x3c   : > { %s1337_s8 = scalar_lea.vmem [#allocation10], %s888_s14  ;;  %vm392_vm0 = vcmask (!%p889_p1), 7168   ;;  %v399_v2 = vld [vmem:[%s1473_s0] sm:$0xff] (!%p889_p1)  ;;  %v400_v3 = vld [vmem:[%s1473_s0 + $0x8] sm:$0xff] (!%p889_p1)  ;;  %v1191_v4 = vmov (!%p889_p1), -1e+30  }
  0x3d   : > { %391 = sbr.rel (%p889_p1) target bundleno = 73 (0x49), region = 89  ;;  %393 = vst.msk [vmem:[#allocation2] sm:$0xff] (!%p889_p1), %vm392_vm0, %v1191_v4  ;;  %394 = vst.msk [vmem:[#allocation2 + $0x8] sm:$0xff] (!%p889_p1), %vm392_vm0, %v1191_v4  ;;  %v1192_v5 = vmov (!%p889_p1), 0.0   ;;  %v401_v6 = vmul.f32 (!%p889_p1), 1428.5714, %v399_v2 }
  0x3e   : > { %395 = vst.msk [vmem:[#allocation3] sm:$0xff] (!%p889_p1), %vm392_vm0, %v1192_v5  ;;  %396 = vst.msk [vmem:[#allocation3 + $0x8] sm:$0xff] (!%p889_p1), %vm392_vm0, %v1192_v5  ;;  %v402_v7 = vmul.f32 (!%p889_p1), 1428.5714, %v400_v3 }
  0x3f   : > { %397 = vst.msk [vmem:[#allocation4] sm:$0xff] (!%p889_p1), %vm392_vm0, %v1192_v5  ;;  %398 = vst.msk [vmem:[#allocation4 + $0x8] sm:$0xff] (!%p889_p1), %vm392_vm0, %v1192_v5 }
  0x40   : > { %v403_v8 = vpack.c.bf16 (!%p889_p1), %v402_v7, %v401_v6 }
  0x42   : > { %404 = vst [vmem:[#allocation5] sm:$0xff] (!%p889_p1), %v403_v8  ;;  %v405_v9 = vunpack.c.l.bf16 (!%p889_p1), %v403_v8  ;;  %v406_v10 = vunpack.c.h.bf16 (!%p889_p1), %v403_v8 }
  0x44   : > { %v407_v11 = vsub.f32 %v401_v6, %v405_v9  ;;  %v408_v12 = vsub.f32 %v402_v7, %v406_v10 }
  0x46   : > { %v409_v13 = vpack.c.bf16 %v408_v12, %v407_v11 }
  0x48   : > { %410 = vst [vmem:[#allocation6] sm:$0xff] %v409_v13 }
  0x49 PF: > { %v1041_v14 = vld [vmem:[%s1331_s13] sm:$0xff]   ;;  %v1193_v15 = vmov 0.0   ;;  %vm1194_vm1 = vmmov 0   ;;  %v1195_v16 = vmov 0   ;;  %v1042_v17 = vld [vmem:[%s1331_s13 + $0x8] sm:$0xff]   ;;  %v1043_v20 = vld [vmem:[%s1331_s13 + $0x10] sm:$0xff]   ;;  %v560_v28 = vlaneseq }
  0x4a   : > { %929 = vmatprep.subr.bf16.mxu1 %v1193_v15  ;;  %949 = vmatprep.subr.bf16.mxu0 %v1193_v15  ;;  %v564_v18 = vld [vmem:[%s1476_s3] sm:$0xff]  ;;  %v565_v19 = vld [vmem:[%s1476_s3 + $0x8] sm:$0xff]  ;;  %v1044_v21 = vld [vmem:[%s1331_s13 + $0x18] sm:$0xff]   ;;  %s898_s26 = sshll.u32 %s1178_s21, 7  ;;  %p899_p7 = scmp.eq.s32.totalorder %s1178_s21, 2 }
  0x4b   : > { %930 = vmatpush3.bf16.xpose.msra.mxu1 %v1041_v14  ;;  %950 = vmatpush3.bf16.xpose.msra.mxu0 %v1041_v14  ;;  %v1045_v22 = vld [vmem:[%s1331_s13 + $0x20] sm:$0xff]   ;;  %v1046_v23 = vld [vmem:[%s1331_s13 + $0x28] sm:$0xff]   ;;  %v1047_v24 = vld [vmem:[%s1331_s13 + $0x30] sm:$0xff]   ;;  %v561_v29 = vand.u32 127, %v560_v28  ;;  %v562_v30 = vstv %s898_s26  ;;  %v1196_v44 = vmov (!%p899_p7), 0   ;;  %vm620_vm4 = vcmask (!%p899_p7), 7168  }
  0x4c   : > { %931 = vmatprep.subr.bf16.mxu1 %v1193_v15  ;;  %951 = vmatprep.subr.bf16.mxu0 %v1193_v15  ;;  %v1048_v25 = vld [vmem:[%s1331_s13 + $0x38] sm:$0xff]   ;;  %v578_v45 = vld [vmem:[#allocation2] sm:$0xff] (!%p899_p7)  ;;  %v579_v48 = vld [vmem:[#allocation2 + $0x8] sm:$0xff] (!%p899_p7) }
  0x4d   : > { %945 = vmatprep.mubr.msk.bf16.mxu1 %vm1194_vm1, %v1193_v15  ;;  %965 = vmatprep.mubr.msk.bf16.mxu0 %vm1194_vm1, %v1193_v15  ;;  %v1361_v31 = vadd.s32 %v562_v30, %v561_v29  ;;  %v610_v2 = vld [vmem:[#allocation3] sm:$0xff] (!%p899_p7)  ;;  %v611_v6 = vld [vmem:[#allocation3 + $0x8] sm:$0xff] (!%p899_p7) }
  0x4e   : > { %1040 = vset.pattern.permute.xlu0 %v1195_v16  ;;  %v427_v27 = vld [vmem:[#allocation5] sm:$0xff]  ;;  %1049 = vset.pattern.permute.xlu1 (!%p899_p7), %v1196_v44 }
  0x4f   : > { %567 = vperm.xlu0 %1040, %v564_v18   ;;  %v428_v26 = vld [vmem:[#allocation6] sm:$0xff] }
  0x53   : > { %932 = vmatpush3.bf16.xpose.msra.mxu1 %v1042_v17  ;;  %952 = vmatpush3.bf16.xpose.msra.mxu0 %v1042_v17 }
  0x54   : > { %933 = vmatprep.subr.bf16.mxu1 %v1193_v15  ;;  %953 = vmatprep.subr.bf16.mxu0 %v1193_v15 }
  0x55   : > { %570 = vperm.xlu0 %1040, %v565_v19  }
  0x59   : > { %1050 = vset.pattern.permute.xlu0 (!%p899_p7), %v1196_v44 }
  0x5b   : > { %934 = vmatpush3.bf16.xpose.msra.mxu1 %v1043_v20  ;;  %954 = vmatpush3.bf16.xpose.msra.mxu0 %v1043_v20 }
  0x5c   : > { %935 = vmatprep.subr.bf16.mxu1 %v1193_v15  ;;  %955 = vmatprep.subr.bf16.mxu0 %v1193_v15 }
  0x63   : > { %936 = vmatpush3.bf16.xpose.msra.mxu1 %v1044_v21  ;;  %956 = vmatpush3.bf16.xpose.msra.mxu0 %v1044_v21 }
  0x64   : > { %937 = vmatprep.subr.bf16.mxu1 %v1193_v15  ;;  %957 = vmatprep.subr.bf16.mxu0 %v1193_v15 }
  0x6b   : > { %938 = vmatpush3.bf16.xpose.msra.mxu1 %v1045_v22  ;;  %958 = vmatpush3.bf16.xpose.msra.mxu0 %v1045_v22 }
  0x6c   : > { %939 = vmatprep.subr.bf16.mxu1 %v1193_v15  ;;  %959 = vmatprep.subr.bf16.mxu0 %v1193_v15 }
  0x73   : > { %940 = vmatpush3.bf16.xpose.msra.mxu1 %v1046_v23  ;;  %960 = vmatpush3.bf16.xpose.msra.mxu0 %v1046_v23 }
  0x74   : > { %941 = vmatprep.subr.bf16.mxu1 %v1193_v15  ;;  %961 = vmatprep.subr.bf16.mxu0 %v1193_v15 }
  0x7b   : > { %942 = vmatpush3.bf16.xpose.msra.mxu1 %v1047_v24  ;;  %962 = vmatpush3.bf16.xpose.msra.mxu0 %v1047_v24 }
  0x7c   : > { %943 = vmatprep.subr.bf16.mxu1 %v1193_v15  ;;  %963 = vmatprep.subr.bf16.mxu0 %v1193_v15 }
  0x83   : > { %944 = vmatpush3.bf16.xpose.msra.mxu1 %v1048_v25  ;;  %964 = vmatpush3.bf16.xpose.msra.mxu0 %v1048_v25 }
  0x8a   : > { %946 = vmatmul.mubr.bf16.vlgmr.msra.gmra.mrb[0].mxu1 %v428_v26  ;;  %966 = vmatmul.mubr.bf16.vlgmr.msra.gmra.mrb[0].mxu0 %v427_v27 }
  0xce   : > { %v1363_v32 = vpop.permute.xlu0 %567 }
  0xcf   : > { %vm572_vm2 = vcmp.ne.s32.totalorder %v1361_v31, %v1363_v32 }
  0xd4   : > { %v1367_v33 = vpop.permute.xlu0 %570 }
  0xd5   : > { %vm573_vm3 = vcmp.ne.s32.totalorder %v1361_v31, %v1367_v33 }
 0x15a   : > { %577 = sbr.rel (%p899_p7) target bundleno = 788 (0x314), region = 93 }
 0x15d   : > { %v511_v34 = vpop.f32.mrb[0].mxu1  ;;  %v552_v35 = vpop.f32.mrb[0].mxu0 }
 0x15e   : > { %v1371_v36 = vadd.f32 %v552_v35, %v511_v34  ;;  %v947_v37 = vpop.f32.mrb[1].mxu1  ;;  %v967_v38 = vpop.f32.mrb[1].mxu0 }
 0x15f   : > { %v514_v39 = vpop.f32.mrb[2].mxu1  ;;  %v555_v40 = vpop.f32.mrb[2].mxu0 }
 0x160   : > { %v1373_v41 = vadd.f32 %v555_v40, %v514_v39  ;;  %v948_v42 = vpop.f32.mrb[3].mxu1  ;;  %v968_v43 = vpop.f32.mrb[3].mxu0  ;;  %580 = vmax.xlane.f32.xlu0 (!%p899_p7), %v1371_v36  ;;  %v592_v53 = vsel (!%p899_p7), %vm572_vm2, %v1371_v36, -1e+30 }
 0x162   : > { %v593_v56 = vsel %vm573_vm3, %v1373_v41, -1e+30 }
 0x164   : > { %582 = vmax.xlane.f32.xlu0 %v1373_v41 }
 0x1ed   : > { %v581_v46 = vpop.xlane.xlu0 %580 }
 0x1ee   : > { %v584_v47 = vmax.f32 %v578_v45, %v581_v46 }
 0x1f0   : > { %v586_v49 = vsub.f32 %v578_v45, %v584_v47  ;;  %623 = vst.msk [vmem:[#allocation2] sm:$0xff] %vm620_vm4, %v584_v47  ;;  %596 = vperm.xlu1 %1049, %v584_v47  }
 0x1f1   : > { %v583_v50 = vpop.xlane.xlu0 %582 }
 0x1f2   : > { %v585_v51 = vmax.f32 %v579_v48, %v583_v50  ;;  %v588_v63 = vmul.f32 1.442695, %v586_v49 }
 0x1f4   : > { %v587_v52 = vsub.f32 %v579_v48, %v585_v51  ;;  %624 = vst.msk [vmem:[#allocation2 + $0x8] sm:$0xff] %vm620_vm4, %v585_v51  ;;  %601 = vperm.xlu1 %1049, %v585_v51  }
 0x1f6   : > { %v590_v0 = vmul.f32 1.442695, %v587_v52 }
 0x26f   : > { %v597_v54 = vpop.permute.xlu1 %596 }
 0x270   : > { %v604_v55 = vsub.f32 %v592_v53, %v597_v54 }
 0x272   : > { %v606_v57 = vmul.f32 1.442695, %v604_v55 }
 0x273   : > { %v602_v58 = vpop.permute.xlu1 %601 }
 0x274   : > { %1051 = vpow2.f32 %v606_v57  ;;  %v605_v59 = vsub.f32 %v593_v56, %v602_v58 }
 0x276   : > { %v608_v60 = vmul.f32 1.442695, %v605_v59 }
 0x278   : > { %1053 = vpow2.f32 %v608_v60 }
 0x279   : > { %1055 = vpow2.f32 %v588_v63 }
 0x27a   : > { %1057 = vpow2.f32 %v590_v0 }
 0x27e   : > { %v1052_v61 = vpop.eup %1051 }
 0x27f   : > { %614 = vadd.xlane.f32.xlu0 %v1052_v61 }
 0x282   : > { %v1054_v62 = vpop.eup %1053 }
 0x283   : > { %616 = vadd.xlane.f32.xlu1 %v1054_v62  ;;  %v1056_v1 = vpop.eup %1055 }
 0x284   : > { %v612_v3 = vmul.f32 %v1056_v1, %v610_v2  ;;  %v1058_v4 = vpop.eup %1057 }
 0x285   : > { %v613_v8 = vmul.f32 %v1058_v4, %v611_v6 }
 0x30c   : > { %v615_v5 = vpop.xlane.xlu0 %614 }
 0x30d   : > { %v618_v7 = vadd.f32 %v615_v5, %v612_v3 }
 0x30f   : > { %621 = vst.msk [vmem:[#allocation3] sm:$0xff] %vm620_vm4, %v618_v7 }
 0x310   : > { %v617_v9 = vpop.xlane.xlu1 %616 }
 0x311   : > { %v619_v10 = vadd.f32 %v617_v9, %v613_v8 }
 0x313   : > { %622 = vst.msk [vmem:[#allocation3 + $0x8] sm:$0xff] %vm620_vm4, %v619_v10 }
 0x314 PF: > { %p900_p2 = scmp.ne.s32.totalorder %s1178_s21, 2 }
 0x315   : > { %vm629_vm5 = vcmp.lt.s32.totalorder (!%p900_p2), %v1361_v31, 320  ;;  %v1197_v13 = vmov (!%p900_p2), 0   ;;  %v634_v14 = vld [vmem:[#allocation2] sm:$0xff] (!%p900_p2)  ;;  %vm676_vm6 = vcmask (!%p900_p2), 7168   ;;  %v635_v17 = vld [vmem:[#allocation2 + $0x8] sm:$0xff] (!%p900_p2) }
 0x316   : > { %628 = sbr.rel (%p900_p2) target bundleno = 1227 (0x4cb), region = 97  ;;  %v630_v11 = vsel (!%p900_p2), %vm629_vm5, %v1371_v36, -1e+30  ;;  %v631_v12 = vsel (!%p900_p2), %vm629_vm5, %v1373_v41, -1e+30  ;;  %1059 = vset.pattern.permute.xlu1 (!%p900_p2), %v1197_v13  ;;  %1060 = vset.pattern.permute.xlu0 (!%p900_p2), %v1197_v13  ;;  %vm632_vm7 = vmand (!%p900_p2), %vm572_vm2, %vm629_vm5  ;;  %v666_v33 = vld [vmem:[#allocation3] sm:$0xff] (!%p900_p2) }
 0x317   : > { %636 = vmax.xlane.f32.xlu0 (!%p900_p2), %v630_v11  ;;  %v648_v22 = vsel (!%p900_p2), %vm632_vm7, %v1371_v36, -1e+30  ;;  %vm633_vm8 = vmand (!%p900_p2), %vm573_vm3, %vm629_vm5 }
 0x318   : > { %v649_v25 = vsel (!%p900_p2), %vm633_vm8, %v1373_v41, -1e+30 }
 0x31a   : > { %v667_v40 = vld [vmem:[#allocation3 + $0x8] sm:$0xff] (!%p900_p2) }
 0x31b   : > { %638 = vmax.xlane.f32.xlu0 (!%p900_p2), %v631_v12 }
 0x3a4   : > { %v637_v15 = vpop.xlane.xlu0 %636 }
 0x3a5   : > { %v640_v16 = vmax.f32 %v634_v14, %v637_v15 }
 0x3a7   : > { %v642_v18 = vsub.f32 %v634_v14, %v640_v16  ;;  %679 = vst.msk [vmem:[#allocation2] sm:$0xff] %vm676_vm6, %v640_v16  ;;  %652 = vperm.xlu1 %1059, %v640_v16  }
 0x3a8   : > { %v639_v19 = vpop.xlane.xlu0 %638 }
 0x3a9   : > { %v641_v20 = vmax.f32 %v635_v17, %v639_v19  ;;  %v644_v34 = vmul.f32 1.442695, %v642_v18 }
 0x3ab   : > { %v643_v21 = vsub.f32 %v635_v17, %v641_v20  ;;  %680 = vst.msk [vmem:[#allocation2 + $0x8] sm:$0xff] %vm676_vm6, %v641_v20  ;;  %657 = vperm.xlu1 %1059, %v641_v20  }
 0x3ad   : > { %v646_v35 = vmul.f32 1.442695, %v643_v21 }
 0x426   : > { %v653_v23 = vpop.permute.xlu1 %652 }
 0x427   : > { %v660_v24 = vsub.f32 %v648_v22, %v653_v23 }
 0x429   : > { %v662_v26 = vmul.f32 1.442695, %v660_v24 }
 0x42a   : > { %v658_v27 = vpop.permute.xlu1 %657 }
 0x42b   : > { %1061 = vpow2.f32 %v662_v26  ;;  %v661_v28 = vsub.f32 %v649_v25, %v658_v27 }
 0x42d   : > { %v664_v29 = vmul.f32 1.442695, %v661_v28 }
 0x42f   : > { %1063 = vpow2.f32 %v664_v29 }
 0x430   : > { %1065 = vpow2.f32 %v644_v34 }
 0x431   : > { %1067 = vpow2.f32 %v646_v35 }
 0x435   : > { %v1062_v30 = vpop.eup %1061 }
 0x436   : > { %670 = vadd.xlane.f32.xlu0 %v1062_v30 }
 0x439   : > { %v1064_v32 = vpop.eup %1063 }
 0x43a   : > { %672 = vadd.xlane.f32.xlu1 %v1064_v32  ;;  %v1066_v31 = vpop.eup %1065 }
 0x43b   : > { %v668_v37 = vmul.f32 %v1066_v31, %v666_v33  ;;  %v1068_v38 = vpop.eup %1067 }
 0x43c   : > { %v669_v43 = vmul.f32 %v1068_v38, %v667_v40 }
 0x4c3   : > { %v671_v39 = vpop.xlane.xlu0 %670 }
 0x4c4   : > { %v674_v42 = vadd.f32 %v671_v39, %v668_v37 }
 0x4c6   : > { %677 = vst.msk [vmem:[#allocation3] sm:$0xff] %vm676_vm6, %v674_v42 }
 0x4c7   : > { %v673_v44 = vpop.xlane.xlu1 %672 }
 0x4c8   : > { %v675_v45 = vadd.f32 %v673_v44, %v669_v43 }
 0x4ca   : > { %678 = vst.msk [vmem:[#allocation3 + $0x8] sm:$0xff] %vm676_vm6, %v675_v45 }
 0x4cb PF: > { %v908_v46 = vld [vmem:[%s1337_s8] sm:$0xff]   ;;  %vm695_vm9 = vcmask 7168   ;;  %v1198_v57 = vmov (!%p900_p2), 0  }
 0x4cc   : > { %v909_v47 = vunpack.c.l.bf16 %v908_v46  ;;  %v910_v48 = vunpack.c.h.bf16 %v908_v46  ;;  %v685_v51 = vld [vmem:[#allocation4] sm:$0xff]  ;;  %v686_v54 = vld [vmem:[#allocation4 + $0x8] sm:$0xff]  ;;  %1069 = vset.pattern.permute.xlu0 (!%p900_p2), %v1198_v57 }
 0x4cd   : > { %v704_v58 = vld [vmem:[%s1477_s4 + $0x8] sm:$0xff] (!%p900_p2)  ;;  %v709_v1 = vld [vmem:[#allocation2] sm:$0xff] (!%p900_p2) }
 0x4ce   : > { %v687_v49 = vmul.f32 %v909_v47, %v1371_v36  ;;  %v688_v50 = vmul.f32 %v910_v48, %v1373_v41  ;;  %v703_v36 = vld [vmem:[%s1477_s4] sm:$0xff] (!%p900_p2)  ;;  %v713_v41 = vld [vmem:[#allocation3] sm:$0xff] (!%p900_p2)  ;;  %v710_v4 = vld [vmem:[#allocation2 + $0x8] sm:$0xff] (!%p900_p2) }
 0x4cf   : > { %1070 = vrcp.f32 (!%p900_p2), %v703_v36  ;;  %v715_v59 = vadd.f32 (!%p900_p2), 1e-12, %v713_v41 }
 0x4d0   : > { %689 = vadd.xlane.f32.xlu0 %v687_v49  ;;  %1072 = vrcp.f32 (!%p900_p2), %v704_v58 }
 0x4d1   : > { %v714_v60 = vld [vmem:[#allocation3 + $0x8] sm:$0xff] (!%p900_p2)  ;;  %1074 = vlog2.f32 (!%p900_p2), %v715_v59 }
 0x4d2   : > { %v716_v61 = vadd.f32 (!%p900_p2), 1e-12, %v714_v60 }
 0x4d4   : > { %691 = vadd.xlane.f32.xlu0 %v688_v50  ;;  %1076 = vlog2.f32 (!%p900_p2), %v716_v61 }
 0x4d9   : > { %v1071_v0 = vpop.eup (!%p900_p2), %1070 }
 0x4da   : > { %v1073_v2 = vpop.eup (!%p900_p2), %1072 }
 0x4db   : > { %v1075_v6 = vpop.eup (!%p900_p2), %1074 }
 0x4dc   : > { %v718_v9 = vmul.f32 (!%p900_p2), 0.6931472, %v1075_v6 }
 0x4de   : > { %v1077_v8 = vpop.eup (!%p900_p2), %1076 }
 0x4df   : > { %v720_v11 = vmul.f32 (!%p900_p2), 0.6931472, %v1077_v8 }
 0x55d   : > { %v690_v52 = vpop.xlane.xlu0 %689 }
 0x55e   : > { %v693_v53 = vadd.f32 %v690_v52, %v685_v51  ;;  %700 = sbr.rel (%p900_p2) target bundleno = 1525 (0x5f5), region = 101 }
 0x560   : > { %696 = vst.msk [vmem:[#allocation4] sm:$0xff] %vm695_vm9, %v693_v53 }
 0x561   : > { %v692_v55 = vpop.xlane.xlu0 %691 }
 0x562   : > { %v694_v56 = vadd.f32 %v692_v55, %v686_v54 }
 0x564   : > { %697 = vst.msk [vmem:[#allocation4 + $0x8] sm:$0xff] %vm695_vm9, %v694_v56 }
 0x567   : > { %v701_v62 = vld [vmem:[#allocation4] sm:$0xff] }
 0x568   : > { %v706_v3 = vmul.f32 %v1071_v0, %v701_v62 }
 0x56a   : > { %v711_v7 = vsub.f32 %v706_v3, %v709_v1 }
 0x56b   : > { %v702_v63 = vld [vmem:[#allocation4 + $0x8] sm:$0xff] }
 0x56c   : > { %v708_v5 = vmul.f32 %v1073_v2, %v702_v63  ;;  %v721_v12 = vsub.f32 %v711_v7, %v718_v9 }
 0x56e   : > { %v712_v10 = vsub.f32 %v708_v5, %v710_v4  ;;  %v723_v14 = vmul.f32 -0.01, %v721_v12 }
 0x570   : > { %v722_v13 = vsub.f32 %v712_v10, %v720_v11  ;;  %727 = vperm.xlu0 %1069, %v723_v14  }
 0x572   : > { %v724_v15 = vmul.f32 -0.01, %v722_v13 }
 0x574   : > { %732 = vperm.xlu0 %1069, %v724_v15  }
 0x5ef   : > { %v728_v16 = vpop.permute.xlu0 %727 }
 0x5f0   : > { %735 = vst [vmem:[#allocation11] sm:$0xff] %v728_v16 }
 0x5f3   : > { %v733_v17 = vpop.permute.xlu0 %732 }
 0x5f4   : > { %736 = vst [vmem:[#allocation11 + $0x8] sm:$0xff] %v733_v17 }
 0x5f5 PF: > { %p1429_p4 = scmp.eq.s32.totalorder %s875_s24, 2  ;;  %s1199_s11 = smov [#allocation11]  }
 0x5f6   : > { %s746_s13 = sshll.u32 %s1199_s11, 4  ;;  %s747_s13 = int_to_ptr.vmem [resolvable:$true] %s746_s13 }
 0x5f7   : > { %s1106_s14 = scalar_lea.vmem %s747_s13, 256  ;;  %p1113_p9 = scmp.lt.s32.totalorder %s747_s13, %s747_s13 }
 0x5f8   : > { %p1107_p5 = scmp.ne.s32.totalorder %s747_s13, %s1106_s14  ;;  %p1114_p10 = scmp.lt.s32.totalorder %s1106_s14, %s1106_s14 }
 0x5fa   : > { %p1108_p6 = pnand %p1107_p5, %p1429_p4  ;;  %p1115_p12 = por %p1114_p10, %p1113_p9 }
 0x5fc   : > { %p1109_p8 = pneg %p1108_p6 }
 0x5fe   : > { %p1116_p13 = pnand %p1115_p12, %p1109_p8 }
 0x600   : > { %1119 = shalt.err (!%p1116_p13)
}
 0x601   : > { %s1120_s24 = scalar_lea.hbm %s1478_s5, 256 }
 0x602   : > { %p1121_p11 = scmp.ne.s32.totalorder %s1478_s5, %s1120_s24  ;;  %p1126_p1 = scmp.lt.u32.totalorder %s1120_s24, %s1478_s5 }
 0x604   : > { %p1122_p0 = pnand %p1121_p11, %p1429_p4 }
 0x606   : > { %p1123_p3 = pneg %p1122_p0 }
 0x608   : > { %p1128_p7 = pnand %p1126_p1, %p1123_p3 }
 0x60a   : > { %1131 = shalt.err (!%p1128_p7)
}
 0x60b   : > { %s1200_s16 = smov 128   ;;  %s1201_s17 = smov 8  }
 0x60c   : > { %974 = dma.vmem_to_hbm [thread:$0]  (%p1429_p4), %s747_s13, 256, %s1478_s5, [#allocation9], %s1200_s16, %s1200_s16, %s1201_s17  }
 0x60d   : > { %1161 = dma.done.wait (%p1429_p4), [#allocation9], 256  }
 0x60e   : > { %1163 = vsyncadd (%p1429_p4), [#allocation9], 4294967040 }
 0x60f PF: > { %s19_s23 = sadd.s32 1, %s1186_s23   ;;  %s1482_s18 = smov %s1170_s19 }
 0x610   : > { %p16_p2 = scmp.ge.s32.totalorder %s19_s23, 5   ;;  %s1483_s19 = smov %s1174_s20 }
 0x611   : > { %s1484_s20 = smov %s1282_s30  ;;  %s1485_s21 = smov %s1182_s22 }
 0x612   : > { %s1486_s22 = smov %s1488_s25  ;;  %18 = sbr.rel (!%p16_p2) target bundleno = 5 (0x5), region = 152 }
 0x619   :  { %762 = vsyncpa [#allocation8], 1 }
 0x61a   :  { %764 = vsyncpa [#allocation8 + $0x1], 1 }
 0x61b   :  { %765 = vsyncpa [#allocation9], 1 }
 0x61c   :  { %767 = vsyncpa [#allocation9 + $0x1], 1 }

</bundles_post_ra>
